<compile_context>
chip_gen: v6e
topology: v6e:2x2x1
jax: 0.10.0
libtpu: 0.0.40
codegen_flags: <defaults>
</compile_context>

<pallas_src>
import jax
import jax.numpy as jnp
from jax import lax
from jax.experimental import pallas as pl
from jax.experimental.pallas import tpu as pltpu


def _round_up(x, m):
    return (x + m - 1) // m * m


def _pooler_kernel(x_ref, w_ref, b_ref, o_ref):
    # x_ref: (tB, H)  first-token activations for this batch tile
    # w_ref: (H, H)   torch Linear weight, (out, in) layout -- NOT pre-transposed
    # b_ref: (1, H)   bias
    # o_ref: (tB, H)
    x = x_ref[...]
    w = w_ref[...]
    if x.dtype != w.dtype:  # robustness for mixed-dtype callers
        ct = jnp.promote_types(x.dtype, w.dtype)
        x = x.astype(ct)
        w = w.astype(ct)
    # y[b, o] = sum_i x[b, i] * w[o, i] == x @ W.T ; contraction on axis 1 of
    # BOTH operands feeds the MXU with a transposed RHS natively (no vxpose of
    # the HxH weight in the Mosaic lowering).
    y = lax.dot_general(
        x, w,
        dimension_numbers=(((1,), (1,)), ((), ())),
        preferred_element_type=jnp.float32,
    )
    y = y + b_ref[...].astype(jnp.float32)
    # Bias add + tanh stay in f32 regardless of input dtype (v5e has no bf16
    # VPU/EUP path); cast only at the final store.
    o_ref[...] = jnp.tanh(y).astype(o_ref.dtype)


def _pick_batch_tile(rows, max_block_b):
    """Batch tile selection.

    - rows <= max_block_b: one tile (don't split tiny batches -- on v7x each
      TC would have to DMA its own copy of the HxH weight).
    - rows <= 2*max_block_b: two even tiles so both v7x TensorCores get work.
    - else: max_block_b tiles.
    """
    if rows <= max_block_b:
        return rows
    if rows <= 2 * max_block_b:
        return _round_up((rows + 1) // 2, 8)
    return max_block_b


def bert_pooler(hidden_states, weight, bias, *, max_block_b=512,
                compute_dtype=None):
    """BertPooler forward: tanh(hidden_states[:, 0] @ weight.T + bias).

    hidden_states: (B, S, H); weight: (H, H) torch-style (out, in); bias: (H,).
    compute_dtype: optional MXU input dtype (e.g. jnp.bfloat16) -- weight and
      the first-token activations are cast once in the wrapper; accumulation
      and tanh stay f32; output keeps hidden_states.dtype.
    max_block_b: batch tile size; bump to 1024 for very large B.
    """
    B, S, H = hidden_states.shape
    out_dtype = hidden_states.dtype
    cd = jnp.dtype(compute_dtype) if compute_dtype is not None else jnp.dtype(out_dtype)
    Hp = _round_up(H, 128)
    padded = Hp != H

    if not padded and cd == jnp.dtype(out_dtype):
        # Lane-aligned hidden size, no cast requested: fuse the first-token
        # slice into the input DMA.  Row-major (B, S, H) viewed as (B, S*H);
        # columns [0, H) of each row are exactly hidden_states[:, 0, :].
        x2d = hidden_states.reshape(B, S * H)
        w2d = weight
        b2d = bias.reshape(1, H)
        rows = B
    elif not padded:
        # Lane-aligned but casting to a compute dtype (e.g. bf16): materialize
        # only the (B, H) first-token slab in the compute dtype.
        x2d = hidden_states[:, 0, :].astype(cd)
        w2d = weight.astype(cd)
        b2d = bias.reshape(1, H)
        rows = B
    else:
        # Unaligned toy shapes only: slice the tiny (B, H) slab and zero-pad so
        # the kernel sees lane-dense tiles and sublane-aligned batch rows.
        rows = _round_up(B, 8)
        first = hidden_states[:, 0, :].astype(cd)
        x2d = jnp.pad(first, ((0, rows - B), (0, Hp - H)))
        w2d = jnp.pad(weight, ((0, Hp - H), (0, Hp - H))).astype(cd)
        b2d = jnp.pad(bias, (0, Hp - H)).reshape(1, Hp)

    tB = _pick_batch_tile(rows, max_block_b)
    grid = (pl.cdiv(rows, tB),)

    x_item = jnp.dtype(x2d.dtype).itemsize
    w_item = jnp.dtype(w2d.dtype).itemsize
    b_item = jnp.dtype(b2d.dtype).itemsize
    out_item = jnp.dtype(out_dtype).itemsize

    cost = pl.CostEstimate(
        flops=2 * B * H * H,
        transcendentals=B * H,
        bytes_accessed=int(B * H * x_item + H * H * w_item + H * b_item
                           + B * H * out_item),
    )

    def run(single_buffer_params):
        # Loop-invariant operands (constant block index) only need one buffer.
        resident = {"pipeline_mode": pl.Buffered(1)} if single_buffer_params else {}
        w_bufs = 1 if single_buffer_params else 2
        # Double-buffered x/out tiles + (single-)buffered weight/bias + margin.
        est_vmem = (2 * tB * Hp * x_item
                    + 2 * tB * Hp * out_item
                    + w_bufs * Hp * Hp * w_item
                    + w_bufs * Hp * b_item
                    + (8 << 20))
        return pl.pallas_call(
            _pooler_kernel,
            out_shape=jax.ShapeDtypeStruct((rows, Hp), out_dtype),
            grid=grid,
            in_specs=[
                pl.BlockSpec((tB, Hp), lambda i: (i, 0)),            # batch tile
                pl.BlockSpec((Hp, Hp), lambda i: (0, 0), **resident),  # weight
                pl.BlockSpec((1, Hp), lambda i: (0, 0), **resident),   # bias
            ],
            out_specs=pl.BlockSpec((tB, Hp), lambda i: (i, 0)),
            compiler_params=pltpu.CompilerParams(
                dimension_semantics=("parallel",),
                vmem_limit_bytes=int(est_vmem),
            ),
            cost_estimate=cost,
        )(x2d, w2d, b2d)

    try:
        out = run(single_buffer_params=True)
    except Exception:
        # pl.Buffered(1) single-buffering is a VMEM-only optimization; fall
        # back to default double-buffering if this jax/Mosaic version rejects
        # it.  Real errors re-raise from the fallback call.
        out = run(single_buffer_params=False)

    if padded:
        out = out[:B, :H]
    return out


if __name__ == "__main__":
    key = jax.random.PRNGKey(0)
    k_x, k_w, k_b, k_x2, k_x3 = jax.random.split(key, 5)

    # 1) Toy (unaligned) shape from the module spec: batch=2, seq=8, hidden=32.
    B, S, H = 2, 8, 32
    hidden_states = jax.random.normal(k_x, (B, S, H), dtype=jnp.float32)
    bound = 1.0 / (H ** 0.5)
    weight = jax.random.uniform(k_w, (H, H), jnp.float32, -bound, bound)  # (out, in)
    bias = jax.random.uniform(k_b, (H,), jnp.float32, -bound, bound)

    out = jax.block_until_ready(bert_pooler(hidden_states, weight, bias))
    ref = jnp.tanh(hidden_states[:, 0, :] @ weight.T + bias)
    assert out.shape == (B, H)
    assert jnp.allclose(out, ref, atol=1e-4, rtol=1e-4)

    # 2) Lane-aligned shape exercising the fused (no-slice, no-pad) fast path.
    B2, S2, H2 = 8, 4, 128
    hs2 = jax.random.normal(k_x2, (B2, S2, H2), dtype=jnp.float32)
    bound2 = 1.0 / (H2 ** 0.5)
    w2 = jax.random.uniform(k_w, (H2, H2), jnp.float32, -bound2, bound2)
    b2 = jax.random.uniform(k_b, (H2,), jnp.float32, -bound2, bound2)

    out2 = jax.block_until_ready(bert_pooler(hs2, w2, b2))
    ref2 = jnp.tanh(hs2[:, 0, :] @ w2.T + b2)
    assert out2.shape == (B2, H2)
    assert jnp.allclose(out2, ref2, atol=1e-4, rtol=1e-4)

    # 3) Aligned path with a multi-tile grid and a partial last block
    #    (B % tB != 0) to exercise the masked boundary store.
    B3, S3, H3 = 20, 4, 128
    hs3 = jax.random.normal(k_x3, (B3, S3, H3), dtype=jnp.float32)
    out3 = jax.block_until_ready(bert_pooler(hs3, w2, b2, max_block_b=8))
    ref3 = jnp.tanh(hs3[:, 0, :] @ w2.T + b2)
    assert out3.shape == (B3, H3)
    assert jnp.allclose(out3, ref3, atol=1e-4, rtol=1e-4)

    # 4) bf16 compute path (half the weight-DMA bytes, f32 accumulation).
    out4 = jax.block_until_ready(bert_pooler(hs2, w2, b2, compute_dtype=jnp.bfloat16))
    x_bf = hs2[:, 0, :].astype(jnp.bfloat16).astype(jnp.float32)
    w_bf = w2.astype(jnp.bfloat16).astype(jnp.float32)
    ref4 = jnp.tanh(x_bf @ w_bf.T + b2)
    assert out4.shape == (B2, H2)
    assert jnp.allclose(out4, ref4, atol=2e-2, rtol=2e-2)

    print("KERNEL_OK")
</pallas_src>

<mosaic_0001>
module attributes {stable_mosaic.version = 11 : i64} {
  func.func @_pooler_kernel(%arg0: i32, %arg1: memref<8x128xf32, #tpu.memory_space<vmem>>, %arg2: memref<128x128xf32, #tpu.memory_space<vmem>>, %arg3: memref<1x128xf32, #tpu.memory_space<vmem>>, %arg4: memref<8x128xf32, #tpu.memory_space<vmem>>) attributes {dimension_semantics = [#tpu.dimension_semantics<parallel>], iteration_bounds = array<i64: 1>, scalar_prefetch = 0 : i64, scratch_operands = 0 : i64, tpu.core_type = #tpu.core_type<tc>, window_params = [{transform_indices = @transform_0, window_bounds = array<i64: 8, 128>}, {pipeline_mode = #tpu.pipeline_mode<synchronous>, transform_indices = @transform_1, window_bounds = array<i64: 128, 128>}, {pipeline_mode = #tpu.pipeline_mode<synchronous>, transform_indices = @transform_2, window_bounds = array<i64: 1, 128>}, {transform_indices = @transform_3, window_bounds = array<i64: 8, 128>}]} {
    %c0 = arith.constant 0 : index
    %c0_0 = arith.constant 0 : index
    %0 = vector.load %arg1[%c0, %c0_0] : memref<8x128xf32, #tpu.memory_space<vmem>>, vector<8x128xf32>
    %c0_1 = arith.constant 0 : index
    %c0_2 = arith.constant 0 : index
    %1 = vector.load %arg2[%c0_1, %c0_2] : memref<128x128xf32, #tpu.memory_space<vmem>>, vector<128x128xf32>
    %cst = arith.constant dense<0.000000e+00> : vector<8x128xf32>
    %2 = tpu.matmul %0, %1, %cst {dimension_numbers = #tpu.dot_dimension_numbers<[1], [1], [0], [0], [0, 0, 1, 0], [], []>} : vector<8x128xf32>, vector<128x128xf32>, vector<8x128xf32> -> vector<8x128xf32>
    %c0_3 = arith.constant 0 : index
    %c0_4 = arith.constant 0 : index
    %3 = vector.load %arg3[%c0_3, %c0_4] : memref<1x128xf32, #tpu.memory_space<vmem>>, vector<1x128xf32>
    %4 = vector.broadcast %3 : vector<1x128xf32> to vector<8x128xf32>
    %5 = arith.addf %2, %4 : vector<8x128xf32>
    %6 = math.tanh %5 : vector<8x128xf32>
    %c0_5 = arith.constant 0 : index
    %c0_6 = arith.constant 0 : index
    %7 = vector.load %arg4[%c0_5, %c0_6] : memref<8x128xf32, #tpu.memory_space<vmem>>, vector<8x128xf32>
    tpu.vector_store %arg4[%c0_5, %c0_6], %6 {strides = array<i32>} : memref<8x128xf32, #tpu.memory_space<vmem>>, vector<8x128xf32>,
    return
  }
  func.func @transform_0(%arg0: i32) -> (i32, i32) {
    %c0_i32 = arith.constant 0 : i32
    %c0_i32_0 = arith.constant 0 : i32
    return %arg0, %c0_i32 : i32, i32
  }
  func.func @transform_1(%arg0: i32) -> (i32, i32) {
    %c0_i32 = arith.constant 0 : i32
    %c0_i32_0 = arith.constant 0 : i32
    %c0_i32_1 = arith.constant 0 : i32
    return %c0_i32, %c0_i32_0 : i32, i32
  }
  func.func @transform_2(%arg0: i32) -> (i32, i32) {
    %c0_i32 = arith.constant 0 : i32
    %c0_i32_0 = arith.constant 0 : i32
    %c0_i32_1 = arith.constant 0 : i32
    return %c0_i32, %c0_i32_0 : i32, i32
  }
  func.func @transform_3(%arg0: i32) -> (i32, i32) {
    %c0_i32 = arith.constant 0 : i32
    %c0_i32_0 = arith.constant 0 : i32
    return %arg0, %c0_i32 : i32, i32
  }
}

module attributes {stable_mosaic.version = 11 : i64} {
  func.func @_pooler_kernel(%arg0: i32, %arg1: memref<8x128xf32, #tpu.memory_space<vmem>>, %arg2: memref<128x128xf32, #tpu.memory_space<vmem>>, %arg3: memref<1x128xf32, #tpu.memory_space<vmem>>, %arg4: memref<8x128xf32, #tpu.memory_space<vmem>>) attributes {dimension_semantics = [#tpu.dimension_semantics<parallel>], iteration_bounds = array<i64: 1>, scalar_prefetch = 0 : i64, scratch_operands = 0 : i64, tpu.core_type = #tpu.core_type<tc>, window_params = [{transform_indices = @transform_0, window_bounds = array<i64: 8, 128>}, {pipeline_mode = #tpu.pipeline_mode<synchronous>, transform_indices = @transform_1, window_bounds = array<i64: 128, 128>}, {pipeline_mode = #tpu.pipeline_mode<synchronous>, transform_indices = @transform_2, window_bounds = array<i64: 1, 128>}, {transform_indices = @transform_3, window_bounds = array<i64: 8, 128>}]} {
    %c0 = arith.constant 0 : index
    %c0_0 = arith.constant 0 : index
    %0 = vector.load %arg1[%c0, %c0_0] : memref<8x128xf32, #tpu.memory_space<vmem>>, vector<8x128xf32>
    %c0_1 = arith.constant 0 : index
    %c0_2 = arith.constant 0 : index
    %1 = vector.load %arg2[%c0_1, %c0_2] : memref<128x128xf32, #tpu.memory_space<vmem>>, vector<128x128xf32>
    %cst = arith.constant dense<0.000000e+00> : vector<8x128xf32>
    %2 = tpu.matmul %0, %1, %cst {dimension_numbers = #tpu.dot_dimension_numbers<[1], [1], [0], [0], [0, 0, 1, 0], [], []>} : vector<8x128xf32>, vector<128x128xf32>, vector<8x128xf32> -> vector<8x128xf32>
    %c0_3 = arith.constant 0 : index
    %c0_4 = arith.constant 0 : index
    %3 = vector.load %arg3[%c0_3, %c0_4] : memref<1x128xf32, #tpu.memory_space<vmem>>, vector<1x128xf32>
    %4 = vector.broadcast %3 : vector<1x128xf32> to vector<8x128xf32>
    %5 = arith.addf %2, %4 : vector<8x128xf32>
    %6 = math.tanh %5 : vector<8x128xf32>
    %c0_5 = arith.constant 0 : index
    %c0_6 = arith.constant 0 : index
    %7 = vector.load %arg4[%c0_5, %c0_6] : memref<8x128xf32, #tpu.memory_space<vmem>>, vector<8x128xf32>
    tpu.vector_store %arg4[%c0_5, %c0_6], %6 {strides = array<i32>} : memref<8x128xf32, #tpu.memory_space<vmem>>, vector<8x128xf32>,
    return
  }
  func.func @transform_0(%arg0: i32) -> (i32, i32) {
    %c0_i32 = arith.constant 0 : i32
    %c0_i32_0 = arith.constant 0 : i32
    return %arg0, %c0_i32 : i32, i32
  }
  func.func @transform_1(%arg0: i32) -> (i32, i32) {
    %c0_i32 = arith.constant 0 : i32
    %c0_i32_0 = arith.constant 0 : i32
    %c0_i32_1 = arith.constant 0 : i32
    return %c0_i32, %c0_i32_0 : i32, i32
  }
  func.func @transform_2(%arg0: i32) -> (i32, i32) {
    %c0_i32 = arith.constant 0 : i32
    %c0_i32_0 = arith.constant 0 : i32
    %c0_i32_1 = arith.constant 0 : i32
    return %c0_i32, %c0_i32_0 : i32, i32
  }
  func.func @transform_3(%arg0: i32) -> (i32, i32) {
    %c0_i32 = arith.constant 0 : i32
    %c0_i32_0 = arith.constant 0 : i32
    return %arg0, %c0_i32 : i32, i32
  }
}

</mosaic_0001>

<bundles_post_ra>
// kernel: tpu_custom_call.1
= control target key start
LH: loop header
LB: loop body
LE: loop exit
PB: predicated region body
PF: predicated region fallthrough
CT: control target
= control target key end

     0   :  { %8 = vsyncpa [#allocation3], 0  ;;  %s320_s0 = inlined_call_operand.hbm [shape: f32[8,128], index: 0, kind: input, shape index: {}]   ;;  %s321_s1 = inlined_call_operand.hbm [shape: f32[128,128], index: 1, kind: input, shape index: {}]   ;;  %s322_s2 = inlined_call_operand.vmem [shape: f32[1,128], index: 2, kind: input, shape index: {}]   ;;  %s323_s3 = inlined_call_operand.hbm [shape: f32[8,128], index: 3, kind: output, shape index: {}]  }
   0x1   :  { %9 = vsyncpa [#allocation6], 0 }
   0x2   :  { %10 = vsyncpa [#allocation4], 0  ;;  %s281_s12 = smov [#allocation2]   ;;  %s282_s14 = smov [#allocation5]  }
   0x3   :  { %s17_s13 = sshll.u32 %s281_s12, 4  ;;  %s26_s15 = sshll.u32 %s282_s14, 4  ;;  %s18_s13 = int_to_ptr.vmem [resolvable:$true] %s17_s13  ;;  %s27_s15 = int_to_ptr.vmem [resolvable:$true] %s26_s15 }
   0x4   :  { %s223_s16 = scalar_lea.vmem %s18_s13, 128  ;;  %p228_p1 = scmp.lt.s32.totalorder %s18_s13, %s18_s13 }
   0x5   :  { %p224_p0 = scmp.ne.s32.totalorder %s18_s13, %s223_s16  ;;  %p229_p2 = scmp.lt.s32.totalorder %s223_s16, %s223_s16 }
   0x7   :  { %p230_p3 = por %p229_p2, %p228_p1 }
   0x9   :  { %p231_p4 = pnand %p230_p3, %p224_p0 }
   0xb   :  { %234 = shalt.err (!%p231_p4)
}
   0xc   :  { %20 = dma.hbm_to_vmem [thread:$0]  %s320_s0, 128, %s18_s13, [#allocation3]  }
   0xd   :  { %s243_s19 = scalar_lea.vmem %s27_s15, 2048  ;;  %p248_p6 = scmp.lt.s32.totalorder %s27_s15, %s27_s15 }
   0xe   :  { %p244_p5 = scmp.ne.s32.totalorder %s27_s15, %s243_s19  ;;  %p249_p7 = scmp.lt.s32.totalorder %s243_s19, %s243_s19 }
  0x10   :  { %p250_p8 = por %p249_p7, %p248_p6 }
  0x12   :  { %p251_p9 = pnand %p250_p8, %p244_p5 }
  0x14   :  { %254 = shalt.err (!%p251_p9)
}
  0x15   :  { %s283_s20 = smov 128   ;;  %s284_s21 = smov 8  }
  0x16   :  { %32 = dma.hbm_to_vmem [thread:$0]  %s321_s1, 2048, %s27_s15, [#allocation6], %s283_s20, %s283_s20, %s284_s21  }
  0x17   :  { %275 = dma.done.wait [#allocation3], 128  }
  0x18   :  { %276 = vsyncadd [#allocation3], 4294967168 }
  0x19   :  { %277 = dma.done.wait [#allocation6], 2048  }
  0x1a   :  { %278 = vsyncadd [#allocation6], 4294965248  ;;  %v285_v0 = vmov 0.0   ;;  %vm286_vm0 = vmmov 0   ;;  %v57_v1 = vld [vmem:[#allocation5 + $0x78] sm:$0xff]  ;;  %v56_v2 = vld [vmem:[#allocation5 + $0x70] sm:$0xff] }
  0x1b   :  { %171 = vmatprep.subr.mxu0 %v285_v0  ;;  %203 = vmatprep.mubr.msk.f32.mxu0 %vm286_vm0, %v285_v0  ;;  %v55_v3 = vld [vmem:[#allocation5 + $0x68] sm:$0xff]  ;;  %v54_v4 = vld [vmem:[#allocation5 + $0x60] sm:$0xff]  ;;  %v53_v5 = vld [vmem:[#allocation5 + $0x58] sm:$0xff]  ;;  %s287_s24 = smov [#allocation7]  }
  0x1c   :  { %172 = vmatpush3.xpose.msra.mxu0 %v57_v1  ;;  %v52_v6 = vld [vmem:[#allocation5 + $0x50] sm:$0xff]  ;;  %v51_v7 = vld [vmem:[#allocation5 + $0x48] sm:$0xff]  ;;  %v50_v8 = vld [vmem:[#allocation5 + $0x40] sm:$0xff]  ;;  %s143_s25 = sshll.u32 %s287_s24, 4  ;;  %s144_s25 = int_to_ptr.vmem [resolvable:$true] %s143_s25 }
  0x1d   :  { %173 = vmatprep.subr.mxu0 %v285_v0  ;;  %v49_v9 = vld [vmem:[#allocation5 + $0x38] sm:$0xff]  ;;  %v48_v10 = vld [vmem:[#allocation5 + $0x30] sm:$0xff]  ;;  %v47_v11 = vld [vmem:[#allocation5 + $0x28] sm:$0xff]  ;;  %s255_s26 = scalar_lea.vmem %s144_s25, 128  ;;  %p260_p11 = scmp.lt.s32.totalorder %s144_s25, %s144_s25 }
  0x1e   :  { %v46_v12 = vld [vmem:[#allocation5 + $0x20] sm:$0xff]  ;;  %v45_v13 = vld [vmem:[#allocation5 + $0x18] sm:$0xff]  ;;  %v44_v14 = vld [vmem:[#allocation5 + $0x10] sm:$0xff]  ;;  %p256_p10 = scmp.ne.s32.totalorder %s144_s25, %s255_s26  ;;  %p261_p12 = scmp.lt.s32.totalorder %s255_s26, %s255_s26 }
  0x1f   :  { %v43_v15 = vld [vmem:[#allocation5 + $0x8] sm:$0xff]  ;;  %v42_v16 = vld [vmem:[#allocation5] sm:$0xff]  ;;  %v41_v17 = vld [vmem:[#allocation2] sm:$0xff] }
  0x20   :  { %174 = vmatpush3.xpose.msra.mxu0 %v56_v2  ;;  %v153_v18 = vld [vmem:[%s322_s2] ss:$0 sm:$0xff]  ;;  %p262_p13 = por %p261_p12, %p260_p11 }
  0x21   :  { %175 = vmatprep.subr.mxu0 %v285_v0 }
  0x22   :  { %p263_p0 = pnand %p262_p13, %p256_p10 }
  0x24   :  { %176 = vmatpush3.xpose.msra.mxu0 %v55_v3 }
  0x25   :  { %177 = vmatprep.subr.mxu0 %v285_v0 }
  0x28   :  { %178 = vmatpush3.xpose.msra.mxu0 %v54_v4 }
  0x29   :  { %179 = vmatprep.subr.mxu0 %v285_v0 }
  0x2c   :  { %180 = vmatpush3.xpose.msra.mxu0 %v53_v5 }
  0x2d   :  { %181 = vmatprep.subr.mxu0 %v285_v0 }
  0x30   :  { %182 = vmatpush3.xpose.msra.mxu0 %v52_v6 }
  0x31   :  { %183 = vmatprep.subr.mxu0 %v285_v0 }
  0x34   :  { %184 = vmatpush3.xpose.msra.mxu0 %v51_v7 }
  0x35   :  { %185 = vmatprep.subr.mxu0 %v285_v0 }
  0x38   :  { %186 = vmatpush3.xpose.msra.mxu0 %v50_v8 }
  0x39   :  { %187 = vmatprep.subr.mxu0 %v285_v0 }
  0x3c   :  { %188 = vmatpush3.xpose.msra.mxu0 %v49_v9 }
  0x3d   :  { %189 = vmatprep.subr.mxu0 %v285_v0 }
  0x40   :  { %190 = vmatpush3.xpose.msra.mxu0 %v48_v10 }
  0x41   :  { %191 = vmatprep.subr.mxu0 %v285_v0 }
  0x44   :  { %192 = vmatpush3.xpose.msra.mxu0 %v47_v11 }
  0x45   :  { %193 = vmatprep.subr.mxu0 %v285_v0 }
  0x48   :  { %194 = vmatpush3.xpose.msra.mxu0 %v46_v12 }
  0x49   :  { %195 = vmatprep.subr.mxu0 %v285_v0 }
  0x4c   :  { %196 = vmatpush3.xpose.msra.mxu0 %v45_v13 }
  0x4d   :  { %197 = vmatprep.subr.mxu0 %v285_v0 }
  0x50   :  { %198 = vmatpush3.xpose.msra.mxu0 %v44_v14 }
  0x51   :  { %199 = vmatprep.subr.mxu0 %v285_v0 }
  0x54   :  { %200 = vmatpush3.xpose.msra.mxu0 %v43_v15 }
  0x55   :  { %201 = vmatprep.subr.mxu0 %v285_v0 }
  0x58   :  { %202 = vmatpush3.xpose.msra.mxu0 %v42_v16 }
  0x5b   :  { %204 = vmatmul.mubr.f32.vlgmr.msra.gmra.mxu0 %v41_v17 }
 0x11b   :  { %v131_v19 = vpop.f32.mrf.mxu0 }
 0x11c   :  { %v132_v20 = vadd.f32 %v153_v18, %v131_v19 }
 0x11d   :  { %v205_v21 = vpop.f32.mrf.mxu0 }
 0x11e   :  { %213 = vtanh.f32 %v132_v20 }
 0x12b   :  { %v214_v22 = vpop.eup %213 }
 0x12c   :  { %136 = vst [vmem:[#allocation7] sm:$0xff] %v214_v22 }
 0x12d   :  { %266 = shalt.err (!%p263_p0)
}
 0x12e   :  { %146 = dma.vmem_to_hbm [thread:$0]  %s144_s25, 128, %s323_s3, [#allocation4]  }
 0x12f   :  { %279 = dma.done.wait [#allocation4], 128  }
 0x130   :  { %280 = vsyncadd [#allocation4], 4294967168 }
 0x131   :  { %150 = vsyncpa [#allocation3], 1 }
 0x132   :  { %151 = vsyncpa [#allocation6], 1 }
 0x133   :  { %152 = vsyncpa [#allocation4], 1 }

// kernel: tpu_custom_call.1
= control target key start
LH: loop header
LB: loop body
LE: loop exit
PB: predicated region body
PF: predicated region fallthrough
CT: control target
= control target key end

     0   :  { %8 = vsyncpa [#allocation3], 0  ;;  %s320_s0 = inlined_call_operand.hbm [shape: f32[8,128], index: 0, kind: input, shape index: {}]   ;;  %s321_s1 = inlined_call_operand.hbm [shape: f32[128,128], index: 1, kind: input, shape index: {}]   ;;  %s322_s2 = inlined_call_operand.vmem [shape: f32[1,128], index: 2, kind: input, shape index: {}]   ;;  %s323_s3 = inlined_call_operand.hbm [shape: f32[8,128], index: 3, kind: output, shape index: {}]  }
   0x1   :  { %9 = vsyncpa [#allocation6], 0 }
   0x2   :  { %10 = vsyncpa [#allocation4], 0  ;;  %s281_s12 = smov [#allocation2]   ;;  %s282_s14 = smov [#allocation5]  }
   0x3   :  { %s17_s13 = sshll.u32 %s281_s12, 4  ;;  %s26_s15 = sshll.u32 %s282_s14, 4  ;;  %s18_s13 = int_to_ptr.vmem [resolvable:$true] %s17_s13  ;;  %s27_s15 = int_to_ptr.vmem [resolvable:$true] %s26_s15 }
   0x4   :  { %s223_s16 = scalar_lea.vmem %s18_s13, 128  ;;  %p228_p1 = scmp.lt.s32.totalorder %s18_s13, %s18_s13 }
   0x5   :  { %p224_p0 = scmp.ne.s32.totalorder %s18_s13, %s223_s16  ;;  %p229_p2 = scmp.lt.s32.totalorder %s223_s16, %s223_s16 }
   0x7   :  { %p230_p3 = por %p229_p2, %p228_p1 }
   0x9   :  { %p231_p4 = pnand %p230_p3, %p224_p0 }
   0xb   :  { %234 = shalt.err (!%p231_p4)
}
   0xc   :  { %20 = dma.hbm_to_vmem [thread:$0]  %s320_s0, 128, %s18_s13, [#allocation3]  }
   0xd   :  { %s243_s19 = scalar_lea.vmem %s27_s15, 2048  ;;  %p248_p6 = scmp.lt.s32.totalorder %s27_s15, %s27_s15 }
   0xe   :  { %p244_p5 = scmp.ne.s32.totalorder %s27_s15, %s243_s19  ;;  %p249_p7 = scmp.lt.s32.totalorder %s243_s19, %s243_s19 }
  0x10   :  { %p250_p8 = por %p249_p7, %p248_p6 }
  0x12   :  { %p251_p9 = pnand %p250_p8, %p244_p5 }
  0x14   :  { %254 = shalt.err (!%p251_p9)
}
  0x15   :  { %s283_s20 = smov 128   ;;  %s284_s21 = smov 8  }
  0x16   :  { %32 = dma.hbm_to_vmem [thread:$0]  %s321_s1, 2048, %s27_s15, [#allocation6], %s283_s20, %s283_s20, %s284_s21  }
  0x17   :  { %275 = dma.done.wait [#allocation3], 128  }
  0x18   :  { %276 = vsyncadd [#allocation3], 4294967168 }
  0x19   :  { %277 = dma.done.wait [#allocation6], 2048  }
  0x1a   :  { %278 = vsyncadd [#allocation6], 4294965248  ;;  %v285_v0 = vmov 0.0   ;;  %vm286_vm0 = vmmov 0   ;;  %v57_v1 = vld [vmem:[#allocation5 + $0x78] sm:$0xff]  ;;  %v56_v2 = vld [vmem:[#allocation5 + $0x70] sm:$0xff] }
  0x1b   :  { %171 = vmatprep.subr.mxu0 %v285_v0  ;;  %203 = vmatprep.mubr.msk.f32.mxu0 %vm286_vm0, %v285_v0  ;;  %v55_v3 = vld [vmem:[#allocation5 + $0x68] sm:$0xff]  ;;  %v54_v4 = vld [vmem:[#allocation5 + $0x60] sm:$0xff]  ;;  %v53_v5 = vld [vmem:[#allocation5 + $0x58] sm:$0xff]  ;;  %s287_s24 = smov [#allocation7]  }
  0x1c   :  { %172 = vmatpush3.xpose.msra.mxu0 %v57_v1  ;;  %v52_v6 = vld [vmem:[#allocation5 + $0x50] sm:$0xff]  ;;  %v51_v7 = vld [vmem:[#allocation5 + $0x48] sm:$0xff]  ;;  %v50_v8 = vld [vmem:[#allocation5 + $0x40] sm:$0xff]  ;;  %s143_s25 = sshll.u32 %s287_s24, 4  ;;  %s144_s25 = int_to_ptr.vmem [resolvable:$true] %s143_s25 }
  0x1d   :  { %173 = vmatprep.subr.mxu0 %v285_v0  ;;  %v49_v9 = vld [vmem:[#allocation5 + $0x38] sm:$0xff]  ;;  %v48_v10 = vld [vmem:[#allocation5 + $0x30] sm:$0xff]  ;;  %v47_v11 = vld [vmem:[#allocation5 + $0x28] sm:$0xff]  ;;  %s255_s26 = scalar_lea.vmem %s144_s25, 128  ;;  %p260_p11 = scmp.lt.s32.totalorder %s144_s25, %s144_s25 }
  0x1e   :  { %v46_v12 = vld [vmem:[#allocation5 + $0x20] sm:$0xff]  ;;  %v45_v13 = vld [vmem:[#allocation5 + $0x18] sm:$0xff]  ;;  %v44_v14 = vld [vmem:[#allocation5 + $0x10] sm:$0xff]  ;;  %p256_p10 = scmp.ne.s32.totalorder %s144_s25, %s255_s26  ;;  %p261_p12 = scmp.lt.s32.totalorder %s255_s26, %s255_s26 }
  0x1f   :  { %v43_v15 = vld [vmem:[#allocation5 + $0x8] sm:$0xff]  ;;  %v42_v16 = vld [vmem:[#allocation5] sm:$0xff]  ;;  %v41_v17 = vld [vmem:[#allocation2] sm:$0xff] }
  0x20   :  { %174 = vmatpush3.xpose.msra.mxu0 %v56_v2  ;;  %v153_v18 = vld [vmem:[%s322_s2] ss:$0 sm:$0xff]  ;;  %p262_p13 = por %p261_p12, %p260_p11 }
  0x21   :  { %175 = vmatprep.subr.mxu0 %v285_v0 }
  0x22   :  { %p263_p0 = pnand %p262_p13, %p256_p10 }
  0x24   :  { %176 = vmatpush3.xpose.msra.mxu0 %v55_v3 }
  0x25   :  { %177 = vmatprep.subr.mxu0 %v285_v0 }
  0x28   :  { %178 = vmatpush3.xpose.msra.mxu0 %v54_v4 }
  0x29   :  { %179 = vmatprep.subr.mxu0 %v285_v0 }
  0x2c   :  { %180 = vmatpush3.xpose.msra.mxu0 %v53_v5 }
  0x2d   :  { %181 = vmatprep.subr.mxu0 %v285_v0 }
  0x30   :  { %182 = vmatpush3.xpose.msra.mxu0 %v52_v6 }
  0x31   :  { %183 = vmatprep.subr.mxu0 %v285_v0 }
  0x34   :  { %184 = vmatpush3.xpose.msra.mxu0 %v51_v7 }
  0x35   :  { %185 = vmatprep.subr.mxu0 %v285_v0 }
  0x38   :  { %186 = vmatpush3.xpose.msra.mxu0 %v50_v8 }
  0x39   :  { %187 = vmatprep.subr.mxu0 %v285_v0 }
  0x3c   :  { %188 = vmatpush3.xpose.msra.mxu0 %v49_v9 }
  0x3d   :  { %189 = vmatprep.subr.mxu0 %v285_v0 }
  0x40   :  { %190 = vmatpush3.xpose.msra.mxu0 %v48_v10 }
  0x41   :  { %191 = vmatprep.subr.mxu0 %v285_v0 }
  0x44   :  { %192 = vmatpush3.xpose.msra.mxu0 %v47_v11 }
  0x45   :  { %193 = vmatprep.subr.mxu0 %v285_v0 }
  0x48   :  { %194 = vmatpush3.xpose.msra.mxu0 %v46_v12 }
  0x49   :  { %195 = vmatprep.subr.mxu0 %v285_v0 }
  0x4c   :  { %196 = vmatpush3.xpose.msra.mxu0 %v45_v13 }
  0x4d   :  { %197 = vmatprep.subr.mxu0 %v285_v0 }
  0x50   :  { %198 = vmatpush3.xpose.msra.mxu0 %v44_v14 }
  0x51   :  { %199 = vmatprep.subr.mxu0 %v285_v0 }
  0x54   :  { %200 = vmatpush3.xpose.msra.mxu0 %v43_v15 }
  0x55   :  { %201 = vmatprep.subr.mxu0 %v285_v0 }
  0x58   :  { %202 = vmatpush3.xpose.msra.mxu0 %v42_v16 }
  0x5b   :  { %204 = vmatmul.mubr.f32.vlgmr.msra.gmra.mxu0 %v41_v17 }
 0x11b   :  { %v131_v19 = vpop.f32.mrf.mxu0 }
 0x11c   :  { %v132_v20 = vadd.f32 %v153_v18, %v131_v19 }
 0x11d   :  { %v205_v21 = vpop.f32.mrf.mxu0 }
 0x11e   :  { %213 = vtanh.f32 %v132_v20 }
 0x12b   :  { %v214_v22 = vpop.eup %213 }
 0x12c   :  { %136 = vst [vmem:[#allocation7] sm:$0xff] %v214_v22 }
 0x12d   :  { %266 = shalt.err (!%p263_p0)
}
 0x12e   :  { %146 = dma.vmem_to_hbm [thread:$0]  %s144_s25, 128, %s323_s3, [#allocation4]  }
 0x12f   :  { %279 = dma.done.wait [#allocation4], 128  }
 0x130   :  { %280 = vsyncadd [#allocation4], 4294967168 }
 0x131   :  { %150 = vsyncpa [#allocation3], 1 }
 0x132   :  { %151 = vsyncpa [#allocation6], 1 }
 0x133   :  { %152 = vsyncpa [#allocation4], 1 }

</bundles_post_ra>
